<compile_context>
chip_gen: v6e
topology: v6e:2x2x1
jax: 0.10.0
libtpu: 0.0.40
codegen_flags: <defaults>
</compile_context>

<pallas_src>
import jax
import jax.numpy as jnp
from jax.experimental import pallas as pl
from jax.experimental.pallas import tpu as pltpu


STATE_SPACE = 2
ACTION_SPACE = 2
HIDDEN = 64
OUT = 3 * ACTION_SPACE     # output rows: [mean(0:2), value(2:4), sigma_pre(4:6)]
OUT_MXU = 8                # fc2 weight rows padded to one 8-sublane MXU tile (VMEM only)


def _round_up(n, m):
    return (n + m - 1) // m * m


# ----------------------------------------------------------------------------- kernel
def policy_kernel(x_ref, fc1_ref, w2_ref, b2_ref, out_ref):
    x = x_ref[...]                                   # (2, tb)  batch on lanes
    fc1 = fc1_ref[...]                               # (64, 3): cols = [w1 row0 | w1 row1 | b1]

    # fc1 with K=2: two VPU broadcast FMAs + bias, all on lane-dense (64, tb) tiles.
    h = fc1[:, 0:1] * x[0:1, :] + fc1[:, 1:2] * x[1:2, :] + fc1[:, 2:3]
    h = jnp.maximum(h, 0.0)                          # ReLU; 0.01 scale folded into w2

    # Fused fc2_mean + fc2_value on the MXU: small stationary weight, N = tb
    # fills all result lanes. Weight rows padded to 8 (rows 6:8 are zeros).
    raw = jnp.dot(w2_ref[...], h, preferred_element_type=jnp.float32) + b2_ref[...]   # (8, tb)

    # Epilogue: plain slice stores; sigmoid only on the two sigma rows.
    out_ref[0:2 * ACTION_SPACE, :] = raw[0:2 * ACTION_SPACE, :]                     # mean, value
    out_ref[2 * ACTION_SPACE:OUT, :] = (
        jax.nn.sigmoid(raw[2 * ACTION_SPACE:OUT, :]) * 2.0 + 0.001)                 # sigma


# ----------------------------------------------------------------------------- wrapper
def fuse_params(params):
    """Canonical params -> kernel-ready fused/transposed params (done once)."""
    w1, b1, w2m, b2m, w2v, b2v = params
    # fc1 packed into one resident operand: (64, 3) = [w1 row0 | w1 row1 | b1]
    fc1p = jnp.stack([w1[0, :], w1[1, :], b1.reshape(-1)], axis=1).astype(jnp.float32)
    # Fused fc2 (row order: mean, value, sigma_pre), transposed to (6, 64),
    # with the 0.01 ReLU scale folded into the weights (bias left unscaled).
    w2T = (jnp.concatenate([w2m[:, :ACTION_SPACE], w2v, w2m[:, ACTION_SPACE:]], axis=1).T
           * jnp.float32(0.01))                                                      # (6, 64)
    b2T = jnp.concatenate(
        [b2m[0, :ACTION_SPACE], b2v[0, :], b2m[0, ACTION_SPACE:]])[:, None]          # (6, 1)
    # Pad weight rows to a full 8-sublane MXU tile; HBM output stays 6 rows wide.
    w2T = jnp.pad(w2T, ((0, OUT_MXU - OUT), (0, 0))).astype(jnp.float32)
    b2T = jnp.pad(b2T, ((0, OUT_MXU - OUT), (0, 0))).astype(jnp.float32)
    return fc1p, w2T, b2T


def policy_forward(x, params, tile_b=32768):
    """x: any shape reshapeable to (-1, 2). Returns (mean, sigma, value)."""
    x2 = x.reshape(-1, STATE_SPACE).astype(jnp.float32)      # mirrors x.view(-1, 2)
    B = x2.shape[0]

    fc1p, w2T, b2T = fuse_params(params)

    # Lane-dense layout: batch maps to lanes, tile is always a multiple of 128.
    b128 = _round_up(max(B, 1), 128)
    tb = min(_round_up(tile_b, 128), b128)
    # Give v7x's two TensorCores >=2 grid steps when the batch allows it.
    if tb == b128 and b128 >= 512 and b128 % 256 == 0:
        tb = b128 // 2
    B_pad = _round_up(B, tb)

    xT = x2.T                                                # (2, B): layout plumbing
    if B_pad != B:
        xT = jnp.pad(xT, ((0, 0), (0, B_pad - B)))

    const = lambda i: (0, 0)
    out = pl.pallas_call(
        policy_kernel,
        out_shape=jax.ShapeDtypeStruct((OUT, B_pad), jnp.float32),
        grid=(B_pad // tb,),
        in_specs=[
            pl.BlockSpec((STATE_SPACE, tb), lambda i: (0, i)),   # x^T tile (pipelined)
            pl.BlockSpec((HIDDEN, 3), const),                    # fc1 packed (VMEM-resident)
            pl.BlockSpec((OUT_MXU, HIDDEN), const),              # fused w2^T (resident)
            pl.BlockSpec((OUT_MXU, 1), const),                   # fused b2^T (resident)
        ],
        out_specs=pl.BlockSpec((OUT, tb), lambda i: (0, i)),     # lane-dense output
        compiler_params=pltpu.CompilerParams(
            dimension_semantics=("parallel",)),                  # shard batch across TCs
    )(xT, fc1p, w2T, b2T)

    mean = out[0:ACTION_SPACE, :B].T
    value = out[ACTION_SPACE:2 * ACTION_SPACE, :B].T
    sigma = out[2 * ACTION_SPACE:OUT, :B].T
    return mean, sigma, value


# ----------------------------------------------------------------------------- params / reference
def init_params(key):
    """Deterministic Xavier-normal weights, zero biases (matches init_weights)."""
    k1, k2, k3 = jax.random.split(key, 3)

    def xavier_normal(k, fan_in, fan_out):
        std = (2.0 / (fan_in + fan_out)) ** 0.5
        # stored as (in, out) so math is x @ W (== PyTorch x @ W.T with (out, in) weights)
        return (std * jax.random.normal(k, (fan_in, fan_out))).astype(jnp.float32)

    w1 = xavier_normal(k1, STATE_SPACE, HIDDEN)               # (2, 64)
    b1 = jnp.zeros((1, HIDDEN), jnp.float32)
    w2m = xavier_normal(k2, HIDDEN, 2 * ACTION_SPACE)         # (64, 4)
    b2m = jnp.zeros((1, 2 * ACTION_SPACE), jnp.float32)
    w2v = xavier_normal(k3, HIDDEN, ACTION_SPACE)             # (64, 2)
    b2v = jnp.zeros((1, ACTION_SPACE), jnp.float32)
    # NOTE: self.var parameter is unused in the PyTorch forward pass, so it is omitted.
    return (w1, b1, w2m, b2m, w2v, b2v)


def reference_forward(x, params):
    """Pure-JAX reference for correctness check (mirrors the PyTorch forward)."""
    w1, b1, w2m, b2m, w2v, b2v = params
    x2 = x.reshape(-1, STATE_SPACE).astype(jnp.float32)
    h = jnp.maximum(x2 @ w1 + b1, 0.0) * 0.01
    am = h @ w2m + b2m
    mean = am[:, :ACTION_SPACE]
    sigma = jax.nn.sigmoid(am[:, ACTION_SPACE:]) * 2.0 + 0.001
    value = h @ w2v + b2v
    return mean, sigma, value


if __name__ == "__main__":
    key = jax.random.PRNGKey(0)
    kx1, kx2, kp = jax.random.split(key, 3)

    params = init_params(kp)

    # small batch: (4, 2, 2) -> view(-1, 2) -> (8, 2)
    x_small = jax.random.normal(kx1, (4, 2, STATE_SPACE), dtype=jnp.float32)
    # odd batch to exercise padding / tiling path: (37, 2)
    x_odd = jax.random.normal(kx2, (37, STATE_SPACE), dtype=jnp.float32)

    ok = True
    for x in (x_small, x_odd):
        mean, sigma, value = policy_forward(x, params)
        jax.block_until_ready((mean, sigma, value))
        m_ref, s_ref, v_ref = reference_forward(x, params)
        ok &= bool(jnp.allclose(mean, m_ref, atol=1e-5))
        ok &= bool(jnp.allclose(sigma, s_ref, atol=1e-5))
        ok &= bool(jnp.allclose(value, v_ref, atol=1e-5))

    assert ok
    print("KERNEL_OK")
</pallas_src>

<mosaic_0001>
module attributes {stable_mosaic.version = 11 : i64} {
  func.func @policy_kernel(%arg0: i32, %arg1: memref<2x128xf32, #tpu.memory_space<vmem>>, %arg2: memref<64x3xf32, #tpu.memory_space<vmem>>, %arg3: memref<8x64xf32, #tpu.memory_space<vmem>>, %arg4: memref<8x1xf32, #tpu.memory_space<vmem>>, %arg5: memref<6x128xf32, #tpu.memory_space<vmem>>) attributes {dimension_semantics = [#tpu.dimension_semantics<parallel>], iteration_bounds = array<i64: 1>, scalar_prefetch = 0 : i64, scratch_operands = 0 : i64, tpu.core_type = #tpu.core_type<tc>, window_params = [{transform_indices = @transform_0, window_bounds = array<i64: 2, 128>}, {pipeline_mode = #tpu.pipeline_mode<synchronous>, transform_indices = @transform_1, window_bounds = array<i64: 64, 3>}, {pipeline_mode = #tpu.pipeline_mode<synchronous>, transform_indices = @transform_2, window_bounds = array<i64: 8, 64>}, {pipeline_mode = #tpu.pipeline_mode<synchronous>, transform_indices = @transform_3, window_bounds = array<i64: 8, 1>}, {transform_indices = @transform_4, window_bounds = array<i64: 6, 128>}]} {
    %c0 = arith.constant 0 : index
    %c0_0 = arith.constant 0 : index
    %0 = vector.load %arg1[%c0, %c0_0] : memref<2x128xf32, #tpu.memory_space<vmem>>, vector<2x128xf32>
    %c0_1 = arith.constant 0 : index
    %c0_2 = arith.constant 0 : index
    %1 = vector.load %arg2[%c0_1, %c0_2] : memref<64x3xf32, #tpu.memory_space<vmem>>, vector<64x3xf32>
    %2 = vector.extract_strided_slice %1 {offsets = [0, 0], sizes = [64, 1], strides = [1, 1]} : vector<64x3xf32> to vector<64x1xf32>
    %3 = vector.extract_strided_slice %0 {offsets = [0, 0], sizes = [1, 128], strides = [1, 1]} : vector<2x128xf32> to vector<1x128xf32>
    %4 = vector.broadcast %2 : vector<64x1xf32> to vector<64x128xf32>
    %5 = vector.broadcast %3 : vector<1x128xf32> to vector<64x128xf32>
    %6 = arith.mulf %4, %5 : vector<64x128xf32>
    %7 = vector.extract_strided_slice %1 {offsets = [0, 1], sizes = [64, 1], strides = [1, 1]} : vector<64x3xf32> to vector<64x1xf32>
    %8 = vector.extract_strided_slice %0 {offsets = [1, 0], sizes = [1, 128], strides = [1, 1]} : vector<2x128xf32> to vector<1x128xf32>
    %9 = vector.broadcast %7 : vector<64x1xf32> to vector<64x128xf32>
    %10 = vector.broadcast %8 : vector<1x128xf32> to vector<64x128xf32>
    %11 = arith.mulf %9, %10 : vector<64x128xf32>
    %12 = arith.addf %6, %11 : vector<64x128xf32>
    %13 = vector.extract_strided_slice %1 {offsets = [0, 2], sizes = [64, 1], strides = [1, 1]} : vector<64x3xf32> to vector<64x1xf32>
    %14 = vector.broadcast %13 : vector<64x1xf32> to vector<64x128xf32>
    %15 = arith.addf %12, %14 : vector<64x128xf32>
    %cst = arith.constant 0.000000e+00 : f32
    %16 = vector.broadcast %cst : f32 to vector<64x128xf32>
    %17 = arith.maximumf %15, %16 : vector<64x128xf32>
    %c0_3 = arith.constant 0 : index
    %c0_4 = arith.constant 0 : index
    %18 = vector.load %arg3[%c0_3, %c0_4] : memref<8x64xf32, #tpu.memory_space<vmem>>, vector<8x64xf32>
    %cst_5 = arith.constant dense<0.000000e+00> : vector<8x128xf32>
    %19 = tpu.matmul %18, %17, %cst_5 {dimension_numbers = #tpu.dot_dimension_numbers<[1], [0], [0], [1], [0, 0, 1, 1], [], []>} : vector<8x64xf32>, vector<64x128xf32>, vector<8x128xf32> -> vector<8x128xf32>
    %c0_6 = arith.constant 0 : index
    %c0_7 = arith.constant 0 : index
    %20 = vector.load %arg4[%c0_6, %c0_7] : memref<8x1xf32, #tpu.memory_space<vmem>>, vector<8x1xf32>
    %21 = vector.broadcast %20 : vector<8x1xf32> to vector<8x128xf32>
    %22 = arith.addf %19, %21 : vector<8x128xf32>
    %23 = vector.extract_strided_slice %22 {offsets = [0, 0], sizes = [4, 128], strides = [1, 1]} : vector<8x128xf32> to vector<4x128xf32>
    %c0_8 = arith.constant 0 : index
    %c0_9 = arith.constant 0 : index
    %24 = vector.load %arg5[%c0_8, %c0_9] : memref<6x128xf32, #tpu.memory_space<vmem>>, vector<4x128xf32>
    tpu.vector_store %arg5[%c0_8, %c0_9], %23 {strides = array<i32>} : memref<6x128xf32, #tpu.memory_space<vmem>>, vector<4x128xf32>,
    %25 = vector.extract_strided_slice %22 {offsets = [4, 0], sizes = [2, 128], strides = [1, 1]} : vector<8x128xf32> to vector<2x128xf32>
    %26 = arith.negf %25 : vector<2x128xf32>
    %27 = math.exp %26 : vector<2x128xf32>
    %cst_10 = arith.constant 1.000000e+00 : f32
    %28 = vector.broadcast %cst_10 : f32 to vector<2x128xf32>
    %29 = arith.addf %28, %27 : vector<2x128xf32>
    %30 = arith.divf %28, %29 : vector<2x128xf32>
    %cst_11 = arith.constant 2.000000e+00 : f32
    %31 = vector.broadcast %cst_11 : f32 to vector<2x128xf32>
    %32 = arith.mulf %30, %31 : vector<2x128xf32>
    %cst_12 = arith.constant 1.000000e-03 : f32
    %33 = vector.broadcast %cst_12 : f32 to vector<2x128xf32>
    %34 = arith.addf %32, %33 : vector<2x128xf32>
    %c4 = arith.constant 4 : index
    %c0_13 = arith.constant 0 : index
    %35 = vector.load %arg5[%c4, %c0_13] : memref<6x128xf32, #tpu.memory_space<vmem>>, vector<2x128xf32>
    tpu.vector_store %arg5[%c4, %c0_13], %34 {strides = array<i32>} : memref<6x128xf32, #tpu.memory_space<vmem>>, vector<2x128xf32>,
    return
  }
  func.func @transform_0(%arg0: i32) -> (i32, i32) {
    %c0_i32 = arith.constant 0 : i32
    %c0_i32_0 = arith.constant 0 : i32
    return %c0_i32, %arg0 : i32, i32
  }
  func.func @transform_1(%arg0: i32) -> (i32, i32) {
    %c0_i32 = arith.constant 0 : i32
    %c0_i32_0 = arith.constant 0 : i32
    %c0_i32_1 = arith.constant 0 : i32
    return %c0_i32, %c0_i32_0 : i32, i32
  }
  func.func @transform_2(%arg0: i32) -> (i32, i32) {
    %c0_i32 = arith.constant 0 : i32
    %c0_i32_0 = arith.constant 0 : i32
    %c0_i32_1 = arith.constant 0 : i32
    return %c0_i32, %c0_i32_0 : i32, i32
  }
  func.func @transform_3(%arg0: i32) -> (i32, i32) {
    %c0_i32 = arith.constant 0 : i32
    %c0_i32_0 = arith.constant 0 : i32
    %c0_i32_1 = arith.constant 0 : i32
    return %c0_i32, %c0_i32_0 : i32, i32
  }
  func.func @transform_4(%arg0: i32) -> (i32, i32) {
    %c0_i32 = arith.constant 0 : i32
    %c0_i32_0 = arith.constant 0 : i32
    return %c0_i32, %arg0 : i32, i32
  }
}

</mosaic_0001>

<bundles_post_ra>
// kernel: tpu_custom_call.1
= control target key start
LH: loop header
LB: loop body
LE: loop exit
PB: predicated region body
PF: predicated region fallthrough
CT: control target
= control target key end

     0   :  { %v365_v2 = vmov 0   ;;  %s441_s0 = inlined_call_operand.vmem [shape: f32[2,128], index: 0, kind: input, shape index: {}]   ;;  %s442_s1 = inlined_call_operand.vmem [shape: f32[64,3], index: 1, kind: input, shape index: {}]   ;;  %s443_s2 = inlined_call_operand.vmem [shape: f32[8,64], index: 2, kind: input, shape index: {}]   ;;  %s444_s3 = inlined_call_operand.vmem [shape: f32[8,1], index: 3, kind: input, shape index: {}]   ;;  %s445_s4 = inlined_call_operand.hbm [shape: f32[6,128], index: 4, kind: output, shape index: {}]  }
   0x1   :  { %v26_v0 = vld [vmem:[%s442_s1 + $0x38] sm:$0xff]  ;;  %v25_v1 = vld [vmem:[%s442_s1 + $0x30] sm:$0xff]  ;;  %321 = vset.pattern.permute.xlu1 %v365_v2  ;;  %320 = vset.pattern.permute.xlu0 %v365_v2  ;;  %v23_v3 = vld [vmem:[%s442_s1 + $0x20] sm:$0xff] }
   0x2   :  { %64 = vperm.xlu0 %320, %v26_v0   ;;  %59 = vperm.xlu1 %321, %v25_v1  }
   0x3   :  { %9 = vsyncpa [#allocation3], 0  ;;  %v366_v4 = vmov 1   ;;  %v22_v5 = vld [vmem:[%s442_s1 + $0x18] sm:$0xff]  ;;  %v24_v6 = vld [vmem:[%s442_s1 + $0x28] sm:$0xff]  ;;  %v367_v7 = vmov 2   ;;  %v67_v17 = vlaneseq }
   0x4   :  { %v368_v8 = vmov 0.0   ;;  %v20_v9 = vld [vmem:[%s442_s1 + $0x8] sm:$0xff]  ;;  %v19_v10 = vld [vmem:[%s442_s1] sm:$0xff]  ;;  %v21_v11 = vld [vmem:[%s442_s1 + $0x10] sm:$0xff]  ;;  %vm369_vm0 = vmmov 0   ;;  %vm186_vm1 = vcmask 523264  }
   0x5   :  { %295 = vmatprep.subr.mxu0 %v368_v8  ;;  %311 = vmatprep.mubr.msk.f32.mxu0 %vm369_vm0, %v368_v8  ;;  %v180_v12 = vld [vmem:[%s444_s3] sm:$0xff]  ;;  %v68_v20 = vshrl.u32 %v67_v17, 7  ;;  %s370_s8 = smov [#allocation2]  }
   0x6   :  { %322 = vset.pattern.permute.xlu1 %v366_v4  ;;  %49 = vperm.xlu0 %320, %v23_v3   ;;  %v18_v25 = vld [vmem:[%s441_s0] sm:$0x3]  ;;  %s276_s9 = sshll.u32 %s370_s8, 4  ;;  %s277_s9 = int_to_ptr.vmem [resolvable:$true] %s276_s9 }
   0x7   :  { %104 = vperm.xlu1 %322, %v25_v1   ;;  %v113_v21 = vsub.s32 1, %v68_v20  ;;  %v69_v23 = vsub.s32 0, %v68_v20  ;;  %p348_p1 = scmp.lt.s32.totalorder %s277_s9, %s277_s9 }
   0x9   :  { %v114_v26 = vrot.slane %v18_v25, %v113_v21  ;;  %v70_v28 = vrot.slane %v18_v25, %v69_v23  ;;  %v179_v21 = vld [vmem:[%s443_s2] sm:$0xff]  ;;  %s343_s2 = scalar_lea.vmem %s277_s9, 128 }
   0xa   :  { %44 = vperm.xlu0 %320, %v22_v5   ;;  %p344_p0 = scmp.ne.s32.totalorder %s277_s9, %s343_s2  ;;  %p349_p2 = scmp.lt.s32.totalorder %s343_s2, %s343_s2 }
   0xb   :  { %323 = vset.pattern.permute.xlu1 %v365_v2 }
   0xc   :  { %54 = vperm.xlu1 %323, %v24_v6   ;;  %p350_p3 = por %p349_p2, %p348_p1 }
   0xe   :  { %328 = vset.pattern.permute.xlu0 %v367_v7  ;;  %p351_p4 = pnand %p350_p3, %p344_p0 }
   0xf   :  { %152 = vperm.xlu0 %328, %v24_v6  }
  0x10   :  { %324 = vset.pattern.permute.xlu1 %v367_v7 }
  0x11   :  { %160 = vperm.xlu1 %324, %v26_v0  }
  0x13   :  { %148 = vperm.xlu0 %328, %v23_v3  }
  0x15   :  { %325 = vset.pattern.permute.xlu1 %v366_v4 }
  0x16   :  { %96 = vperm.xlu1 %325, %v23_v3  }
  0x17   :  { %331 = vset.pattern.permute.xlu0 %v366_v4 }
  0x18   :  { %108 = vperm.xlu0 %331, %v26_v0  }
  0x1a   :  { %326 = vset.pattern.permute.xlu1 %v367_v7 }
  0x1b   :  { %156 = vperm.xlu1 %326, %v25_v1  }
  0x1c   :  { %100 = vperm.xlu0 %331, %v24_v6  }
  0x1f   :  { %327 = vset.pattern.permute.xlu1 %v366_v4 }
  0x20   :  { %92 = vperm.xlu1 %327, %v22_v5   ;;  %84 = vperm.xlu0 %331, %v20_v9  }
  0x24   :  { %329 = vset.pattern.permute.xlu1 %v365_v2  ;;  %80 = vperm.xlu0 %331, %v19_v10  }
  0x25   :  { %39 = vperm.xlu1 %329, %v21_v11  }
  0x28   :  { %336 = vset.pattern.permute.xlu0 %v367_v7 }
  0x29   :  { %330 = vset.pattern.permute.xlu1 %v366_v4  ;;  %136 = vperm.xlu0 %336, %v20_v9  }
  0x2a   :  { %88 = vperm.xlu1 %330, %v21_v11  }
  0x2d   :  { %338 = vset.pattern.permute.xlu0 %v365_v2 }
  0x2e   :  { %332 = vset.pattern.permute.xlu1 %v365_v2 }
  0x2f   :  { %34 = vperm.xlu1 %332, %v20_v9  }
  0x33   :  { %333 = vset.pattern.permute.xlu1 %v367_v7 }
  0x34   :  { %144 = vperm.xlu1 %333, %v22_v5  }
  0x38   :  { %334 = vset.pattern.permute.xlu1 %v365_v2 }
  0x39   :  { %29 = vperm.xlu1 %334, %v19_v10  }
  0x3d   :  { %335 = vset.pattern.permute.xlu1 %v367_v7 }
  0x3e   :  { %140 = vperm.xlu1 %335, %v21_v11  }
  0x42   :  { %132 = vperm.xlu1 %335, %v19_v10  }
  0x46   :  { %337 = vset.pattern.permute.xlu1 %v365_v2 }
  0x47   :  { %183 = vperm.xlu1 %337, %v180_v12  }
  0x7d   :  { %v60_v13 = vpop.permute.xlu1 %59  ;;  %v65_v14 = vpop.permute.xlu0 %64 }
  0x7e   :  { %v78_v30 = vmul.f32 %v70_v28, %v65_v14  ;;  %v77_v33 = vmul.f32 %v70_v28, %v60_v13 }
  0x81   :  { %v50_v15 = vpop.permute.xlu0 %49 }
  0x82   :  { %v105_v16 = vpop.permute.xlu1 %104  ;;  %v75_v34 = vmul.f32 %v70_v28, %v50_v15 }
  0x83   :  { %v121_v31 = vmul.f32 %v114_v26, %v105_v16 }
  0x85   :  { %v45_v18 = vpop.permute.xlu0 %44  ;;  %v129_v39 = vadd.f32 %v121_v31, %v77_v33 }
  0x86   :  { %v74_v59 = vmul.f32 %v70_v28, %v45_v18 }
  0x87   :  { %v55_v19 = vpop.permute.xlu1 %54 }
  0x88   :  { %v76_v40 = vmul.f32 %v70_v28, %v55_v19 }
  0x8a   :  { %v153_v22 = vpop.permute.xlu0 %152 }
  0x8c   :  { %v161_v24 = vpop.permute.xlu1 %160 }
  0x8e   :  { %v149_v27 = vpop.permute.xlu0 %148 }
  0x91   :  { %v97_v29 = vpop.permute.xlu1 %96 }
  0x92   :  { %v119_v35 = vmul.f32 %v114_v26, %v97_v29 }
  0x93   :  { %v109_v32 = vpop.permute.xlu0 %108 }
  0x94   :  { %v122_v36 = vmul.f32 %v114_v26, %v109_v32  ;;  %v127_v42 = vadd.f32 %v119_v35, %v75_v34 }
  0x96   :  { %v130_v37 = vadd.f32 %v122_v36, %v78_v30  ;;  %v157_v38 = vpop.permute.xlu1 %156  ;;  %v167_v51 = vadd.f32 %v149_v27, %v127_v42 }
  0x97   :  { %v101_v41 = vpop.permute.xlu0 %100  ;;  %v169_v43 = vadd.f32 %v157_v38, %v129_v39 }
  0x98   :  { %v120_v44 = vmul.f32 %v114_v26, %v101_v41  ;;  %v170_v45 = vadd.f32 %v161_v24, %v130_v37  ;;  %v175_v54 = vmax.f32 %v167_v51, 0.0 }
  0x99   :  { %v177_v49 = vmax.f32 %v169_v43, 0.0 }
  0x9a   :  { %v128_v46 = vadd.f32 %v120_v44, %v76_v40  ;;  %v178_v47 = vmax.f32 %v170_v45, 0.0 }
  0x9b   :  { %v93_v48 = vpop.permute.xlu1 %92  ;;  %v85_v58 = vpop.permute.xlu0 %84 }
  0x9c   :  { %296 = vmatpush3.msra.mxu0 %v178_v47  ;;  %v168_v50 = vadd.f32 %v153_v22, %v128_v46  ;;  %v118_v56 = vmul.f32 %v114_v26, %v93_v48  ;;  %v116_v0 = vmul.f32 %v114_v26, %v85_v58 }
  0x9d   :  { %297 = vmatprep.subr.mxu0 %v368_v8 }
  0x9e   :  { %298 = vmatpush3.msra.mxu0 %v177_v49  ;;  %v176_v52 = vmax.f32 %v168_v50, 0.0  ;;  %v126_v60 = vadd.f32 %v118_v56, %v74_v59 }
  0x9f   :  { %299 = vmatprep.subr.mxu0 %v368_v8  ;;  %v81_v63 = vpop.permute.xlu0 %80 }
  0xa0   :  { %v40_v53 = vpop.permute.xlu1 %39  ;;  %300 = vmatpush3.msra.mxu0 %v176_v52  ;;  %v115_v12 = vmul.f32 %v114_v26, %v81_v63 }
  0xa1   :  { %301 = vmatprep.subr.mxu0 %v368_v8  ;;  %v73_v5 = vmul.f32 %v70_v28, %v40_v53 }
  0xa2   :  { %302 = vmatpush3.msra.mxu0 %v175_v54 }
  0xa3   :  { %303 = vmatprep.subr.mxu0 %v368_v8 }
  0xa4   :  { %v137_v7 = vpop.permute.xlu0 %136 }
  0xa5   :  { %v89_v55 = vpop.permute.xlu1 %88 }
  0xa6   :  { %v117_v3 = vmul.f32 %v114_v26, %v89_v55 }
  0xa8   :  { %v125_v10 = vadd.f32 %v117_v3, %v73_v5 }
  0xaa   :  { %v35_v57 = vpop.permute.xlu1 %34 }
  0xab   :  { %v72_v1 = vmul.f32 %v70_v28, %v35_v57 }
  0xad   :  { %v124_v6 = vadd.f32 %v116_v0, %v72_v1 }
  0xaf   :  { %v145_v61 = vpop.permute.xlu1 %144  ;;  %v164_v13 = vadd.f32 %v137_v7, %v124_v6 }
  0xb0   :  { %v166_v62 = vadd.f32 %v145_v61, %v126_v60 }
  0xb1   :  { %v172_v18 = vmax.f32 %v164_v13, 0.0 }
  0xb2   :  { %v174_v2 = vmax.f32 %v166_v62, 0.0 }
  0xb4   :  { %v30_v4 = vpop.permute.xlu1 %29  ;;  %304 = vmatpush3.msra.mxu0 %v174_v2 }
  0xb5   :  { %305 = vmatprep.subr.mxu0 %v368_v8  ;;  %v71_v9 = vmul.f32 %v70_v28, %v30_v4 }
  0xb7   :  { %v123_v16 = vadd.f32 %v115_v12, %v71_v9 }
  0xb9   :  { %v141_v11 = vpop.permute.xlu1 %140 }
  0xba   :  { %v165_v14 = vadd.f32 %v141_v11, %v125_v10 }
  0xbc   :  { %v173_v15 = vmax.f32 %v165_v14, 0.0 }
  0xbd   :  { %v133_v17 = vpop.permute.xlu1 %132 }
  0xbe   :  { %v163_v19 = vadd.f32 %v133_v17, %v123_v16  ;;  %306 = vmatpush3.msra.mxu0 %v173_v15 }
  0xbf   :  { %307 = vmatprep.subr.mxu0 %v368_v8 }
  0xc0   :  { %v171_v20 = vmax.f32 %v163_v19, 0.0  ;;  %308 = vmatpush3.msra.mxu0 %v172_v18 }
  0xc1   :  { %309 = vmatprep.subr.mxu0 %v368_v8 }
  0xc2   :  { %310 = vmatpush3.msra.mxu0 %v171_v20  ;;  %v184_v22 = vpop.permute.xlu1 %183 }
  0xc3   :  { %312 = vmatmul.mubr.msk.f32.vlgmr.msra.gmra.mxu0 %vm186_vm1, %v179_v21 }
 0x183   :  { %v256_v23 = vpop.f32.mrf.mxu0 }
 0x184   :  { %v257_v24 = vadd.f32 %v256_v23, %v184_v22 }
 0x185   :  { %v313_v25 = vpop.f32.mrf.mxu0 }
 0x186   :  { %260 = vst [vmem:[#allocation2] sm:$0xf] %v257_v24  ;;  %v285_v26 = vmul.f32 -1.442695, %v257_v24 }
 0x188   :  { %339 = vpow2.f32 %v285_v26 }
 0x195   :  { %v340_v27 = vpop.eup %339 }
 0x196   :  { %v264_v28 = vadd.f32 1.0, %v340_v27 }
 0x198   :  { %341 = vrcp.f32 %v264_v28 }
 0x1a5   :  { %v342_v29 = vpop.eup %341 }
 0x1a6   :  { %v267_v30 = vmul.f32 2.0, %v342_v29 }
 0x1a8   :  { %v268_v31 = vadd.f32 0.001, %v267_v30 }
 0x1aa   :  { %269 = vst [vmem:[#allocation2] sm:$0x30] %v268_v31 }
 0x1ab   :  { %354 = shalt.err (!%p351_p4)
}
 0x1ac   :  { %279 = dma.vmem_to_hbm [thread:$0]  %s277_s9, 128, %s445_s4, [#allocation3]  }
 0x1ad   :  { %363 = dma.done.wait [#allocation3], 128  }
 0x1ae   :  { %364 = vsyncadd [#allocation3], 4294967168 }
 0x1af   :  { %283 = vsyncpa [#allocation3], 1 }

</bundles_post_ra>
